<compile_context>
chip_gen: v6e
topology: v6e:2x2x1
jax: 0.10.0
libtpu: 0.0.40
codegen_flags: <defaults>
</compile_context>

<pallas_src>
import math

import jax
import jax.numpy as jnp
from jax.experimental import pallas as pl
from jax.experimental.pallas import tpu as pltpu

LANES = 128
_F32_TEMPS = 6  # x1,x2 casts + sx1,sx2 + p1,p2 kept live across the unrolled loop


def _vmem_capacity_bytes():
    try:
        cap = int(getattr(pltpu.get_tpu_info(), "vmem_capacity_bytes"))
        if cap > 0:
            return cap
    except Exception:
        pass
    return 64 << 20  # conservative default (v7x per-TC VMEM)


def _tile_working_set_bytes(tile_f, b1, b2, itemsize):
    in_bytes = (b1 + b2) * tile_f * itemsize * 2       # double-buffered input blocks
    tmp_bytes = _F32_TEMPS * max(b1, b2) * tile_f * 4  # f32 temps in the moment loop
    return in_bytes + tmp_bytes


def _plan_feature_tiling(d, b1, b2, itemsize):
    """Return (tile_f, num_tiles, needs_mask)."""
    if d <= LANES:
        # Full feature axis as a single block (block == full array dims is legal).
        return d, 1, False

    cap = _vmem_capacity_bytes()
    budget = min(cap // 2, 48 << 20)  # headroom for output buffers / compiler scratch

    tile_f = LANES
    for cand in (8192, 4096, 2048, 1024, 512, 256, 128):
        if cand < d and _tile_working_set_bytes(cand, b1, b2, itemsize) <= budget:
            tile_f = cand
            break
    # TODO(synk): for very large B even a 128-wide tile can exceed VMEM; add a
    # batch grid axis (raw-moment accumulation + binomial finisher) for that case.

    # Prefer an exact divisor of d of similar size so no masked tail is needed.
    if d % tile_f != 0:
        for cand in (8192, 4096, 2048, 1024, 512, 256, 128):
            if cand <= tile_f and d % cand == 0:
                tile_f = cand
                break

    num_tiles = -(-d // tile_f)
    needs_mask = (d % tile_f) != 0
    return tile_f, num_tiles, needs_mask


def _make_cmd_kernel(n_moments, rows, b1, b2, d, tile_f, needs_mask, mxu_offload):
    inv_b1 = 1.0 / float(b1)  # plain Python floats: nothing traced is captured
    inv_b2 = 1.0 / float(b2)

    def batch_sum(p, use_mxu):
        # (B, TILE_F) -> (1, TILE_F) sum over the batch axis.
        if use_mxu:
            # Push the reduction through the idle MXU (vector-extended slot)
            # instead of burning VALU slots: ones(8,B) @ p, read row 0.
            ones8 = jnp.ones((8, p.shape[0]), jnp.float32)
            s8 = jnp.dot(ones8, p, preferred_element_type=jnp.float32)  # (8, TILE_F)
            return s8[0:1, :]
        return jnp.sum(p, axis=0, keepdims=True)

    def kernel(x1_ref, x2_ref, out_ref):
        # Cast per-tile so bf16 inputs stay bf16 in HBM (half the DMA traffic).
        x1 = x1_ref[...].astype(jnp.float32)   # (B1, TILE_F)
        x2 = x2_ref[...].astype(jnp.float32)   # (B2, TILE_F)

        if needs_mask:
            # Tail tile of a ragged feature dim: zero out-of-range columns.
            col = jax.lax.broadcasted_iota(jnp.int32, (1, tile_f), 1)
            valid = (pl.program_id(0) * tile_f + col) < d
            x1 = jnp.where(valid, x1, 0.0)
            x2 = jnp.where(valid, x2, 0.0)

        # Per-feature means over the batch (sublane reduction).
        mx1 = jnp.sum(x1, axis=0, keepdims=True) * inv_b1   # (1, TILE_F)
        mx2 = jnp.sum(x2, axis=0, keepdims=True) * inv_b2   # (1, TILE_F)

        d0 = mx1 - mx2
        partials = [jnp.sum(d0 * d0)]                        # first-moment term

        sx1 = x1 - mx1
        sx2 = x2 - mx2
        p1 = sx1
        p2 = sx2
        for k in range(2, n_moments + 1):                    # unrolled at trace time
            p1 = p1 * sx1                                    # sx1 ** k
            p2 = p2 * sx2                                    # sx2 ** k
            use_mxu = mxu_offload and (k % 2 == 1)           # ~half of reductions -> MXU
            m1 = batch_sum(p1, use_mxu) * inv_b1
            m2 = batch_sum(p2, use_mxu) * inv_b2
            dk = m1 - m2
            partials.append(jnp.sum(dk * dk))

        # Pack the n_moments scalar partials into a lane-dense (rows, 128) slab:
        # row i carries partial i broadcast across lanes (VPU selects only,
        # single unmasked lane-dense store on the way out).
        row_ids = jax.lax.broadcasted_iota(jnp.int32, (rows, LANES), 0)
        acc = jnp.zeros((rows, LANES), jnp.float32)
        for idx, s in enumerate(partials):
            acc = jnp.where(row_ids == idx, s, acc)
        out_ref[...] = acc

    return kernel


def cmd_pallas(x1, x2, n_moments=5):
    assert x1.shape[1:] == x2.shape[1:], "x1/x2 must share non-batch dims"
    b1 = int(x1.shape[0])
    b2 = int(x2.shape[0])
    d = int(math.prod(x1.shape[1:])) if x1.ndim > 1 else 1

    # Pure reshape (no jnp.pad -> no extra HBM copy of the inputs).
    x1f = x1.reshape(b1, d)
    x2f = x2.reshape(b2, d)

    itemsize = jnp.dtype(x1.dtype).itemsize
    tile_f, num_tiles, needs_mask = _plan_feature_tiling(d, b1, b2, itemsize)
    rows = max(8, ((n_moments + 7) // 8) * 8)   # lane-dense (rows,128) per-tile output

    mxu_offload = (b1 >= 8 and b2 >= 8)  # skip the MXU trick for tiny batches
    kernel = _make_cmd_kernel(n_moments, rows, b1, b2, d, tile_f, needs_mask, mxu_offload)

    # Explicit VMEM budget: inputs (double-buffered) + f32 temps + output slabs.
    working = _tile_working_set_bytes(tile_f, b1, b2, itemsize) + 2 * rows * LANES * 4
    vmem_cap = _vmem_capacity_bytes()
    vmem_limit = int(max(16 << 20,
                         min(max(32 << 20, 2 * working), vmem_cap - (4 << 20))))

    out = pl.pallas_call(
        kernel,
        out_shape=jax.ShapeDtypeStruct((num_tiles, rows, LANES), jnp.float32),
        grid_spec=pltpu.PrefetchScalarGridSpec(
            num_scalar_prefetch=0,
            grid=(num_tiles,),
            in_specs=[
                pl.BlockSpec((b1, tile_f), lambda i: (0, i)),
                pl.BlockSpec((b2, tile_f), lambda i: (0, i)),
            ],
            # Leading grid dim squeezed -> kernel stores one (rows, 128) slab.
            out_specs=pl.BlockSpec((None, rows, LANES), lambda i: (i, 0, 0)),
        ),
        compiler_params=pltpu.CompilerParams(
            # Independent per-tile partial sums -> fully parallel grid
            # (lets Mosaic shard feature tiles across both TensorCores on v7x).
            dimension_semantics=("parallel",),
            vmem_limit_bytes=vmem_limit,
        ),
    )(x1f, x2f)

    # Tiny finisher in plain JAX: num_tiles x n_moments floats.
    moment_sums = out[:, :n_moments, 0].sum(axis=0)            # (n_moments,)
    return jnp.sum(jnp.sqrt(moment_sums + jnp.float32(1e-6)))


def cmd_ref(x1, x2, n_moments=5):
    """Pure-JAX reference with the same math as the torch CMD module."""
    x1 = x1.astype(jnp.float32)
    x2 = x2.astype(jnp.float32)
    mx1 = jnp.mean(x1, axis=0)
    mx2 = jnp.mean(x2, axis=0)
    sx1 = x1 - mx1
    sx2 = x2 - mx2

    def matchnorm(a, b):
        return jnp.sqrt(jnp.sum((a - b) ** 2) + 1e-6)

    loss = matchnorm(mx1, mx2)
    for k in range(2, n_moments + 1):
        loss = loss + matchnorm(jnp.mean(sx1 ** k, axis=0), jnp.mean(sx2 ** k, axis=0))
    return loss


if __name__ == "__main__":
    key = jax.random.PRNGKey(0)
    k1, k2, k3, k4 = jax.random.split(key, 4)

    # CMD operates on feature activations: [batch, hidden].
    x1 = jax.random.normal(k1, (8, 32), dtype=jnp.float32)
    x2 = jax.random.normal(k2, (8, 32), dtype=jnp.float32) * 1.1 + 0.05

    loss = cmd_pallas(x1, x2, n_moments=5)
    jax.block_until_ready(loss)
    ref = cmd_ref(x1, x2, n_moments=5)
    assert jnp.allclose(loss, ref, rtol=1e-4, atol=1e-4), (loss, ref)

    # Also exercise the tiled + masked-tail + MXU-reduction path (ragged D, 2 tiles).
    y1 = jax.random.normal(k3, (16, 200), dtype=jnp.float32)
    y2 = jax.random.normal(k4, (16, 200), dtype=jnp.float32) * 0.9 - 0.05
    loss2 = cmd_pallas(y1, y2, n_moments=5)
    jax.block_until_ready(loss2)
    ref2 = cmd_ref(y1, y2, n_moments=5)
    assert jnp.allclose(loss2, ref2, rtol=1e-4, atol=1e-4), (loss2, ref2)

    print("KERNEL_OK")
</pallas_src>

<mosaic_0001>
module attributes {stable_mosaic.version = 11 : i64} {
  func.func @kernel(%arg0: i32, %arg1: memref<8x32xf32, #tpu.memory_space<vmem>>, %arg2: memref<8x32xf32, #tpu.memory_space<vmem>>, %arg3: memref<1x8x128xf32, #tpu.memory_space<vmem>>) attributes {dimension_semantics = [#tpu.dimension_semantics<parallel>], iteration_bounds = array<i64: 1>, scalar_prefetch = 0 : i64, scratch_operands = 0 : i64, tpu.core_type = #tpu.core_type<tc>, window_params = [{transform_indices = @transform_0, window_bounds = array<i64: 8, 32>}, {transform_indices = @transform_1, window_bounds = array<i64: 8, 32>}, {transform_indices = @transform_2, window_bounds = array<i64: 1, 8, 128>}]} {
    %c0 = arith.constant 0 : index
    %c0_0 = arith.constant 0 : index
    %0 = vector.load %arg1[%c0, %c0_0] : memref<8x32xf32, #tpu.memory_space<vmem>>, vector<8x32xf32>
    %c0_1 = arith.constant 0 : index
    %c0_2 = arith.constant 0 : index
    %1 = vector.load %arg2[%c0_1, %c0_2] : memref<8x32xf32, #tpu.memory_space<vmem>>, vector<8x32xf32>
    %cst = arith.constant dense<0.000000e+00> : vector<32xf32>
    %2 = vector.multi_reduction <add>, %0, %cst [0] : vector<8x32xf32> to vector<32xf32>
    %3 = vector.shape_cast %2 : vector<32xf32> to vector<1x32xf32>
    %cst_3 = arith.constant 1.250000e-01 : f32
    %4 = vector.broadcast %cst_3 : f32 to vector<1x32xf32>
    %5 = arith.mulf %3, %4 : vector<1x32xf32>
    %cst_4 = arith.constant dense<0.000000e+00> : vector<32xf32>
    %6 = vector.multi_reduction <add>, %1, %cst_4 [0] : vector<8x32xf32> to vector<32xf32>
    %7 = vector.shape_cast %6 : vector<32xf32> to vector<1x32xf32>
    %cst_5 = arith.constant 1.250000e-01 : f32
    %8 = vector.broadcast %cst_5 : f32 to vector<1x32xf32>
    %9 = arith.mulf %7, %8 : vector<1x32xf32>
    %10 = arith.subf %5, %9 : vector<1x32xf32>
    %11 = arith.mulf %10, %10 : vector<1x32xf32>
    %12 = vector.shape_cast %11 : vector<1x32xf32> to vector<1x1x32xf32>
    %cst_6 = arith.constant dense<0.000000e+00> : vector<1xf32>
    %13 = vector.multi_reduction <add>, %12, %cst_6 [1, 2] : vector<1x1x32xf32> to vector<1xf32>
    %14 = vector.shape_cast %13 : vector<1xf32> to vector<1x1x1xf32>
    %15 = vector.extract %14[0, 0, 0] : f32 from vector<1x1x1xf32>
    %16 = vector.broadcast %5 : vector<1x32xf32> to vector<8x32xf32>
    %17 = arith.subf %0, %16 : vector<8x32xf32>
    %18 = vector.broadcast %9 : vector<1x32xf32> to vector<8x32xf32>
    %19 = arith.subf %1, %18 : vector<8x32xf32>
    %20 = arith.mulf %17, %17 : vector<8x32xf32>
    %21 = arith.mulf %19, %19 : vector<8x32xf32>
    %cst_7 = arith.constant dense<0.000000e+00> : vector<32xf32>
    %22 = vector.multi_reduction <add>, %20, %cst_7 [0] : vector<8x32xf32> to vector<32xf32>
    %23 = vector.shape_cast %22 : vector<32xf32> to vector<1x32xf32>
    %cst_8 = arith.constant 1.250000e-01 : f32
    %24 = vector.broadcast %cst_8 : f32 to vector<1x32xf32>
    %25 = arith.mulf %23, %24 : vector<1x32xf32>
    %cst_9 = arith.constant dense<0.000000e+00> : vector<32xf32>
    %26 = vector.multi_reduction <add>, %21, %cst_9 [0] : vector<8x32xf32> to vector<32xf32>
    %27 = vector.shape_cast %26 : vector<32xf32> to vector<1x32xf32>
    %cst_10 = arith.constant 1.250000e-01 : f32
    %28 = vector.broadcast %cst_10 : f32 to vector<1x32xf32>
    %29 = arith.mulf %27, %28 : vector<1x32xf32>
    %30 = arith.subf %25, %29 : vector<1x32xf32>
    %31 = arith.mulf %30, %30 : vector<1x32xf32>
    %32 = vector.shape_cast %31 : vector<1x32xf32> to vector<1x1x32xf32>
    %cst_11 = arith.constant dense<0.000000e+00> : vector<1xf32>
    %33 = vector.multi_reduction <add>, %32, %cst_11 [1, 2] : vector<1x1x32xf32> to vector<1xf32>
    %34 = vector.shape_cast %33 : vector<1xf32> to vector<1x1x1xf32>
    %35 = vector.extract %34[0, 0, 0] : f32 from vector<1x1x1xf32>
    %36 = arith.mulf %20, %17 : vector<8x32xf32>
    %37 = arith.mulf %21, %19 : vector<8x32xf32>
    %cst_12 = arith.constant 1.000000e+00 : f32
    %38 = vector.broadcast %cst_12 : f32 to vector<8x8xf32>
    %cst_13 = arith.constant dense<0.000000e+00> : vector<8x32xf32>
    %39 = tpu.matmul %38, %36, %cst_13 {dimension_numbers = #tpu.dot_dimension_numbers<[1], [0], [0], [1], [0, 0, 1, 1], [], []>} : vector<8x8xf32>, vector<8x32xf32>, vector<8x32xf32> -> vector<8x32xf32>
    %40 = vector.extract_strided_slice %39 {offsets = [0, 0], sizes = [1, 32], strides = [1, 1]} : vector<8x32xf32> to vector<1x32xf32>
    %cst_14 = arith.constant 1.250000e-01 : f32
    %41 = vector.broadcast %cst_14 : f32 to vector<1x32xf32>
    %42 = arith.mulf %40, %41 : vector<1x32xf32>
    %cst_15 = arith.constant 1.000000e+00 : f32
    %43 = vector.broadcast %cst_15 : f32 to vector<8x8xf32>
    %cst_16 = arith.constant dense<0.000000e+00> : vector<8x32xf32>
    %44 = tpu.matmul %43, %37, %cst_16 {dimension_numbers = #tpu.dot_dimension_numbers<[1], [0], [0], [1], [0, 0, 1, 1], [], []>} : vector<8x8xf32>, vector<8x32xf32>, vector<8x32xf32> -> vector<8x32xf32>
    %45 = vector.extract_strided_slice %44 {offsets = [0, 0], sizes = [1, 32], strides = [1, 1]} : vector<8x32xf32> to vector<1x32xf32>
    %cst_17 = arith.constant 1.250000e-01 : f32
    %46 = vector.broadcast %cst_17 : f32 to vector<1x32xf32>
    %47 = arith.mulf %45, %46 : vector<1x32xf32>
    %48 = arith.subf %42, %47 : vector<1x32xf32>
    %49 = arith.mulf %48, %48 : vector<1x32xf32>
    %50 = vector.shape_cast %49 : vector<1x32xf32> to vector<1x1x32xf32>
    %cst_18 = arith.constant dense<0.000000e+00> : vector<1xf32>
    %51 = vector.multi_reduction <add>, %50, %cst_18 [1, 2] : vector<1x1x32xf32> to vector<1xf32>
    %52 = vector.shape_cast %51 : vector<1xf32> to vector<1x1x1xf32>
    %53 = vector.extract %52[0, 0, 0] : f32 from vector<1x1x1xf32>
    %54 = arith.mulf %36, %17 : vector<8x32xf32>
    %55 = arith.mulf %37, %19 : vector<8x32xf32>
    %cst_19 = arith.constant dense<0.000000e+00> : vector<32xf32>
    %56 = vector.multi_reduction <add>, %54, %cst_19 [0] : vector<8x32xf32> to vector<32xf32>
    %57 = vector.shape_cast %56 : vector<32xf32> to vector<1x32xf32>
    %cst_20 = arith.constant 1.250000e-01 : f32
    %58 = vector.broadcast %cst_20 : f32 to vector<1x32xf32>
    %59 = arith.mulf %57, %58 : vector<1x32xf32>
    %cst_21 = arith.constant dense<0.000000e+00> : vector<32xf32>
    %60 = vector.multi_reduction <add>, %55, %cst_21 [0] : vector<8x32xf32> to vector<32xf32>
    %61 = vector.shape_cast %60 : vector<32xf32> to vector<1x32xf32>
    %cst_22 = arith.constant 1.250000e-01 : f32
    %62 = vector.broadcast %cst_22 : f32 to vector<1x32xf32>
    %63 = arith.mulf %61, %62 : vector<1x32xf32>
    %64 = arith.subf %59, %63 : vector<1x32xf32>
    %65 = arith.mulf %64, %64 : vector<1x32xf32>
    %66 = vector.shape_cast %65 : vector<1x32xf32> to vector<1x1x32xf32>
    %cst_23 = arith.constant dense<0.000000e+00> : vector<1xf32>
    %67 = vector.multi_reduction <add>, %66, %cst_23 [1, 2] : vector<1x1x32xf32> to vector<1xf32>
    %68 = vector.shape_cast %67 : vector<1xf32> to vector<1x1x1xf32>
    %69 = vector.extract %68[0, 0, 0] : f32 from vector<1x1x1xf32>
    %70 = arith.mulf %54, %17 : vector<8x32xf32>
    %71 = arith.mulf %55, %19 : vector<8x32xf32>
    %cst_24 = arith.constant 1.000000e+00 : f32
    %72 = vector.broadcast %cst_24 : f32 to vector<8x8xf32>
    %cst_25 = arith.constant dense<0.000000e+00> : vector<8x32xf32>
    %73 = tpu.matmul %72, %70, %cst_25 {dimension_numbers = #tpu.dot_dimension_numbers<[1], [0], [0], [1], [0, 0, 1, 1], [], []>} : vector<8x8xf32>, vector<8x32xf32>, vector<8x32xf32> -> vector<8x32xf32>
    %74 = vector.extract_strided_slice %73 {offsets = [0, 0], sizes = [1, 32], strides = [1, 1]} : vector<8x32xf32> to vector<1x32xf32>
    %cst_26 = arith.constant 1.250000e-01 : f32
    %75 = vector.broadcast %cst_26 : f32 to vector<1x32xf32>
    %76 = arith.mulf %74, %75 : vector<1x32xf32>
    %cst_27 = arith.constant 1.000000e+00 : f32
    %77 = vector.broadcast %cst_27 : f32 to vector<8x8xf32>
    %cst_28 = arith.constant dense<0.000000e+00> : vector<8x32xf32>
    %78 = tpu.matmul %77, %71, %cst_28 {dimension_numbers = #tpu.dot_dimension_numbers<[1], [0], [0], [1], [0, 0, 1, 1], [], []>} : vector<8x8xf32>, vector<8x32xf32>, vector<8x32xf32> -> vector<8x32xf32>
    %79 = vector.extract_strided_slice %78 {offsets = [0, 0], sizes = [1, 32], strides = [1, 1]} : vector<8x32xf32> to vector<1x32xf32>
    %cst_29 = arith.constant 1.250000e-01 : f32
    %80 = vector.broadcast %cst_29 : f32 to vector<1x32xf32>
    %81 = arith.mulf %79, %80 : vector<1x32xf32>
    %82 = arith.subf %76, %81 : vector<1x32xf32>
    %83 = arith.mulf %82, %82 : vector<1x32xf32>
    %84 = vector.shape_cast %83 : vector<1x32xf32> to vector<1x1x32xf32>
    %cst_30 = arith.constant dense<0.000000e+00> : vector<1xf32>
    %85 = vector.multi_reduction <add>, %84, %cst_30 [1, 2] : vector<1x1x32xf32> to vector<1xf32>
    %86 = vector.shape_cast %85 : vector<1xf32> to vector<1x1x1xf32>
    %87 = vector.extract %86[0, 0, 0] : f32 from vector<1x1x1xf32>
    %88 = tpu.iota {dimensions = array<i32: 0>} : vector<8x128xi32>
    %cst_31 = arith.constant 0.000000e+00 : f32
    %89 = vector.broadcast %cst_31 : f32 to vector<8x128xf32>
    %c0_i32 = arith.constant 0 : i32
    %90 = vector.broadcast %c0_i32 : i32 to vector<8x128xi32>
    %91 = arith.cmpi eq, %88, %90 : vector<8x128xi32>
    %92 = vector.broadcast %15 : f32 to vector<8x128xf32>
    %93 = arith.select %91, %92, %89 : vector<8x128xi1>, vector<8x128xf32>
    %c1_i32 = arith.constant 1 : i32
    %94 = vector.broadcast %c1_i32 : i32 to vector<8x128xi32>
    %95 = arith.cmpi eq, %88, %94 : vector<8x128xi32>
    %96 = vector.broadcast %35 : f32 to vector<8x128xf32>
    %97 = arith.select %95, %96, %93 : vector<8x128xi1>, vector<8x128xf32>
    %c2_i32 = arith.constant 2 : i32
    %98 = vector.broadcast %c2_i32 : i32 to vector<8x128xi32>
    %99 = arith.cmpi eq, %88, %98 : vector<8x128xi32>
    %100 = vector.broadcast %53 : f32 to vector<8x128xf32>
    %101 = arith.select %99, %100, %97 : vector<8x128xi1>, vector<8x128xf32>
    %c3_i32 = arith.constant 3 : i32
    %102 = vector.broadcast %c3_i32 : i32 to vector<8x128xi32>
    %103 = arith.cmpi eq, %88, %102 : vector<8x128xi32>
    %104 = vector.broadcast %69 : f32 to vector<8x128xf32>
    %105 = arith.select %103, %104, %101 : vector<8x128xi1>, vector<8x128xf32>
    %c4_i32 = arith.constant 4 : i32
    %106 = vector.broadcast %c4_i32 : i32 to vector<8x128xi32>
    %107 = arith.cmpi eq, %88, %106 : vector<8x128xi32>
    %108 = vector.broadcast %87 : f32 to vector<8x128xf32>
    %109 = arith.select %107, %108, %105 : vector<8x128xi1>, vector<8x128xf32>
    %c0_32 = arith.constant 0 : index
    %c0_33 = arith.constant 0 : index
    %c0_34 = arith.constant 0 : index
    %110 = vector.load %arg3[%c0_32, %c0_33, %c0_34] : memref<1x8x128xf32, #tpu.memory_space<vmem>>, vector<1x8x128xf32>
    %111 = vector.shape_cast %110 : vector<1x8x128xf32> to vector<8x128xf32>
    %112 = vector.shape_cast %109 : vector<8x128xf32> to vector<1x8x128xf32>
    tpu.vector_store %arg3[%c0_32, %c0_33, %c0_34], %112 {strides = array<i32>} : memref<1x8x128xf32, #tpu.memory_space<vmem>>, vector<1x8x128xf32>,
    return
  }
  func.func @transform_0(%arg0: i32) -> (i32, i32) {
    %c0_i32 = arith.constant 0 : i32
    %c0_i32_0 = arith.constant 0 : i32
    return %c0_i32, %arg0 : i32, i32
  }
  func.func @transform_1(%arg0: i32) -> (i32, i32) {
    %c0_i32 = arith.constant 0 : i32
    %c0_i32_0 = arith.constant 0 : i32
    return %c0_i32, %arg0 : i32, i32
  }
  func.func @transform_2(%arg0: i32) -> (i32, i32, i32) {
    %c0_i32 = arith.constant 0 : i32
    %c0_i32_0 = arith.constant 0 : i32
    %c0_i32_1 = arith.constant 0 : i32
    return %arg0, %c0_i32, %c0_i32_0 : i32, i32, i32
  }
}

</mosaic_0001>

<bundles_post_ra>
// kernel: tpu_custom_call.1
= control target key start
LH: loop header
LB: loop body
LE: loop exit
PB: predicated region body
PF: predicated region fallthrough
CT: control target
= control target key end

     0   :  { %7 = vsyncpa [#allocation3], 0  ;;  %s643_s0 = inlined_call_operand.hbm [shape: f32[8,32], index: 0, kind: input, shape index: {}]   ;;  %s644_s1 = inlined_call_operand.hbm [shape: f32[8,32], index: 1, kind: input, shape index: {}]   ;;  %s645_s2 = inlined_call_operand.hbm [shape: f32[1,8,128], index: 2, kind: output, shape index: {}]  }
   0x1   :  { %8 = vsyncpa [#allocation6], 0 }
   0x2   :  { %9 = vsyncpa [#allocation4], 0  ;;  %s594_s9 = smov [#allocation2]   ;;  %s595_s11 = smov [#allocation5]  }
   0x3   :  { %s16_s10 = sshll.u32 %s594_s9, 4  ;;  %s26_s12 = sshll.u32 %s595_s11, 4  ;;  %s17_s10 = int_to_ptr.vmem [resolvable:$true] %s16_s10  ;;  %s27_s12 = int_to_ptr.vmem [resolvable:$true] %s26_s12 }
   0x4   :  { %s536_s13 = scalar_lea.vmem %s17_s10, 128  ;;  %p541_p1 = scmp.lt.s32.totalorder %s17_s10, %s17_s10 }
   0x5   :  { %p537_p0 = scmp.ne.s32.totalorder %s17_s10, %s536_s13  ;;  %p542_p2 = scmp.lt.s32.totalorder %s536_s13, %s536_s13 }
   0x7   :  { %p543_p3 = por %p542_p2, %p541_p1 }
   0x9   :  { %p544_p4 = pnand %p543_p3, %p537_p0 }
   0xb   :  { %547 = shalt.err (!%p544_p4)
}
   0xc   :  { %19 = dma.hbm_to_vmem [thread:$0]  %s643_s0, 128, %s17_s10, [#allocation3]  }
   0xd   :  { %s556_s16 = scalar_lea.vmem %s27_s12, 128  ;;  %p561_p6 = scmp.lt.s32.totalorder %s27_s12, %s27_s12 }
   0xe   :  { %p557_p5 = scmp.ne.s32.totalorder %s27_s12, %s556_s16  ;;  %p562_p7 = scmp.lt.s32.totalorder %s556_s16, %s556_s16 }
  0x10   :  { %p563_p8 = por %p562_p7, %p561_p6 }
  0x12   :  { %p564_p9 = pnand %p563_p8, %p557_p5 }
  0x14   :  { %567 = shalt.err (!%p564_p9)
}
  0x15   :  { %29 = dma.hbm_to_vmem [thread:$0]  %s644_s1, 128, %s27_s12, [#allocation6]  }
  0x16   :  { %588 = dma.done.wait [#allocation3], 128  }
  0x17   :  { %589 = vsyncadd [#allocation3], 4294967168 }
  0x18   :  { %590 = dma.done.wait [#allocation6], 128  }
  0x19   :  { %591 = vsyncadd [#allocation6], 4294967168  ;;  %v596_v0 = vmov 0.0   ;;  %vm597_vm0 = vmmov 0   ;;  %vm38_vm1 = vcmask 261120   ;;  %v36_v1 = vld [vmem:[#allocation2] sm:$0xff] }
  0x1a   :  { %492 = vmatprep.subr.mxu0 %v596_v0  ;;  %497 = vmatprep.subr.mxu1 %v596_v0  ;;  %v37_v2 = vld [vmem:[#allocation5] sm:$0xff]  ;;  %v39_v3 = vsel %vm38_vm1, %v36_v1, 0.0  ;;  %vm102_vm2 = vcmask 64512   ;;  %vm57_vm3 = vcmask 253952   ;;  %v598_v29 = vmov 1.0   ;;  %s599_s20 = smov [#allocation7]  }
  0x1b   :  { %494 = vmatprep.mubr.msk.f32.mxu0 %vm597_vm0, %v596_v0  ;;  %499 = vmatprep.mubr.msk.f32.mxu1 %vm597_vm0, %v596_v0  ;;  %v47_v4 = vsel %vm38_vm1, %v37_v2, 0.0  ;;  %v40_v5 = vrot.slane %v39_v3, 4  ;;  %s470_s21 = sshll.u32 %s599_s20, 4  ;;  %s471_s21 = int_to_ptr.vmem [resolvable:$true] %s470_s21 }
  0x1c   :  { %v48_v6 = vrot.slane %v47_v4, 4  ;;  %s568_s24 = scalar_lea.vmem %s471_s21, 128  ;;  %p573_p11 = scmp.lt.s32.totalorder %s471_s21, %s471_s21 }
  0x1d   :  { %v41_v7 = vadd.f32 %v40_v5, %v39_v3  ;;  %p569_p10 = scmp.ne.s32.totalorder %s471_s21, %s568_s24  ;;  %p574_p12 = scmp.lt.s32.totalorder %s568_s24, %s568_s24 }
  0x1e   :  { %v49_v8 = vadd.f32 %v48_v6, %v47_v4 }
  0x1f   :  { %v42_v9 = vrot.slane %v41_v7, 2  ;;  %p575_p13 = por %p574_p12, %p573_p11 }
  0x20   :  { %v50_v10 = vrot.slane %v49_v8, 2 }
  0x21   :  { %v43_v11 = vadd.f32 %v42_v9, %v41_v7  ;;  %p576_p0 = pnand %p575_p13, %p569_p10 }
  0x22   :  { %v51_v12 = vadd.f32 %v50_v10, %v49_v8 }
  0x23   :  { %v44_v13 = vrot.slane %v43_v11, 1 }
  0x24   :  { %v52_v14 = vrot.slane %v51_v12, 1 }
  0x25   :  { %v45_v15 = vadd.f32 %v44_v13, %v43_v11 }
  0x26   :  { %v53_v16 = vadd.f32 %v52_v14, %v51_v12 }
  0x27   :  { %v46_v17 = vmul.f32 0.125, %v45_v15 }
  0x28   :  { %v54_v18 = vmul.f32 0.125, %v53_v16 }
  0x29   :  { %v68_v19 = vsub.f32 %v36_v1, %v46_v17 }
  0x2a   :  { %v69_v20 = vsub.f32 %v37_v2, %v54_v18  ;;  %v55_v21 = vsub.f32 %v46_v17, %v54_v18 }
  0x2b   :  { %v70_v22 = vmul.f32 %v68_v19, %v68_v19 }
  0x2c   :  { %v71_v23 = vmul.f32 %v69_v20, %v69_v20  ;;  %v56_v26 = vmul.f32 %v55_v21, %v55_v21 }
  0x2d   :  { %v100_v24 = vmul.f32 %v70_v22, %v68_v19  ;;  %v72_v35 = vsel %vm38_vm1, %v70_v22, 0.0 }
  0x2e   :  { %v101_v25 = vmul.f32 %v71_v23, %v69_v20  ;;  %v58_v34 = vsel %vm57_vm3, %v56_v26, 0.0  ;;  %v80_v36 = vsel %vm38_vm1, %v71_v23, 0.0  ;;  %v73_v37 = vrot.slane %v72_v35, 4 }
  0x2f   :  { %493 = vmatpush3.msra.mxu0 %v100_v24  ;;  %v260_v27 = vmul.f32 %v100_v24, %v68_v19  ;;  %59 = vadd.xlane.f32.xlu0 %v58_v34  ;;  %v81_v38 = vrot.slane %v80_v36, 4 }
  0x30   :  { %498 = vmatpush3.msra.mxu1 %v101_v25  ;;  %v261_v28 = vmul.f32 %v101_v25, %v69_v20  ;;  %495 = vmatmul.mubr.msk.f32.vlgmr.msra.gmra.mxu0 %vm102_vm2, %v598_v29  ;;  %v74_v39 = vadd.f32 %v73_v37, %v72_v35 }
  0x31   :  { %500 = vmatmul.mubr.msk.f32.vlgmr.msra.gmra.mxu1 %vm102_vm2, %v598_v29  ;;  %v262_v30 = vsel %vm38_vm1, %v260_v27, 0.0  ;;  %v290_v31 = vmul.f32 %v260_v27, %v68_v19  ;;  %502 = vmatprep.subr.mxu0 %v596_v0  ;;  %v82_v40 = vadd.f32 %v81_v38, %v80_v36 }
  0x32   :  { %v270_v32 = vsel %vm38_vm1, %v261_v28, 0.0  ;;  %v291_v33 = vmul.f32 %v261_v28, %v69_v20  ;;  %507 = vmatprep.subr.mxu1 %v596_v0  ;;  %504 = vmatprep.mubr.msk.f32.mxu0 %vm597_vm0, %v596_v0  ;;  %v75_v41 = vrot.slane %v74_v39, 2  ;;  %v263_v43 = vrot.slane %v262_v30, 4 }
  0x33   :  { %509 = vmatprep.mubr.msk.f32.mxu1 %vm597_vm0, %v596_v0  ;;  %503 = vmatpush3.msra.mxu0 %v290_v31  ;;  %v83_v42 = vrot.slane %v82_v40, 2  ;;  %v271_v44 = vrot.slane %v270_v32, 4 }
  0x34   :  { %508 = vmatpush3.msra.mxu1 %v291_v33  ;;  %505 = vmatmul.mubr.msk.f32.vlgmr.msra.gmra.mxu0 %vm102_vm2, %v598_v29  ;;  %v76_v45 = vadd.f32 %v75_v41, %v74_v39  ;;  %v264_v49 = vadd.f32 %v263_v43, %v262_v30 }
  0x35   :  { %510 = vmatmul.mubr.msk.f32.vlgmr.msra.gmra.mxu1 %vm102_vm2, %v598_v29  ;;  %v84_v46 = vadd.f32 %v83_v42, %v82_v40  ;;  %v272_v50 = vadd.f32 %v271_v44, %v270_v32 }
  0x36   :  { %v77_v47 = vrot.slane %v76_v45, 1  ;;  %v265_v55 = vrot.slane %v264_v49, 2 }
  0x37   :  { %v85_v48 = vrot.slane %v84_v46, 1  ;;  %v273_v56 = vrot.slane %v272_v50, 2 }
  0x38   :  { %v78_v51 = vadd.f32 %v77_v47, %v76_v45  ;;  %v266_v60 = vadd.f32 %v265_v55, %v264_v49 }
  0x39   :  { %v86_v52 = vadd.f32 %v85_v48, %v84_v46  ;;  %v274_v61 = vadd.f32 %v273_v56, %v272_v50 }
  0x3a   :  { %v79_v53 = vmul.f32 0.125, %v78_v51  ;;  %v267_v62 = vrot.slane %v266_v60, 1 }
  0x3b   :  { %v87_v54 = vmul.f32 0.125, %v86_v52  ;;  %v275_v63 = vrot.slane %v274_v61, 1 }
  0x3c   :  { %v268_v0 = vadd.f32 %v267_v62, %v266_v60  ;;  %v446_v60 = vlaneseq }
  0x3d   :  { %v88_v57 = vsub.f32 %v79_v53, %v87_v54  ;;  %v276_v1 = vadd.f32 %v275_v63, %v274_v61 }
  0x3e   :  { %v269_v2 = vmul.f32 0.125, %v268_v0  ;;  %v447_v61 = vshrl.u32 %v446_v60, 7 }
  0x3f   :  { %v89_v58 = vmul.f32 %v88_v57, %v88_v57  ;;  %v277_v3 = vmul.f32 0.125, %v276_v1 }
  0x40   :  { %vm448_vm4 = vcmp.eq.s32.totalorder %v447_v61, 0  ;;  %vm451_vm5 = vcmp.eq.s32.totalorder %v447_v61, 1  ;;  %vm454_vm6 = vcmp.eq.s32.totalorder %v447_v61, 2  ;;  %vm457_vm7 = vcmp.eq.s32.totalorder %v447_v61, 3 }
  0x41   :  { %v90_v59 = vsel %vm57_vm3, %v89_v58, 0.0  ;;  %v278_v4 = vsub.f32 %v269_v2, %v277_v3  ;;  %vm460_vm8 = vcmp.eq.s32.totalorder %v447_v61, 4 }
  0x42   :  { %91 = vadd.xlane.f32.xlu0 %v90_v59 }
  0x43   :  { %v279_v19 = vmul.f32 %v278_v4, %v278_v4 }
  0x45   :  { %v280_v25 = vsel %vm57_vm3, %v279_v19, 0.0 }
  0xb8   :  { %v60_v9 = vpop.xlane.xlu0 %59 }
  0xb9   :  { %v61_v13 = vrot.slane %v60_v9, 4 }
  0xbb   :  { %v62_v24 = vadd.f32 %v61_v13, %v60_v9 }
  0xbd   :  { %v63_v30 = vrot.slane %v62_v24, 2 }
  0xbf   :  { %v64_v33 = vadd.f32 %v63_v30, %v62_v24 }
  0xc1   :  { %v65_v35 = vrot.slane %v64_v33, 1 }
  0xc3   :  { %v66_v37 = vadd.f32 %v65_v35, %v64_v33 }
  0xc5   :  { %512 = vpush %v66_v37 }
  0xcb   :  { %v92_v27 = vpop.xlane.xlu0 %91 }
  0xcc   :  { %v93_v28 = vrot.slane %v92_v27, 4 }
  0xce   :  { %v94_v31 = vadd.f32 %v93_v28, %v92_v27 }
  0xd0   :  { %v95_v32 = vrot.slane %v94_v31, 2 }
  0xd2   :  { %v96_v34 = vadd.f32 %v95_v32, %v94_v31 }
  0xd4   :  { %v97_v36 = vrot.slane %v96_v34, 1 }
  0xd6   :  { %v98_v38 = vadd.f32 %v97_v36, %v96_v34 }
  0xd8   :  { %514 = vpush %v98_v38 }
  0xf0   :  { %v172_v5 = vpop.f32.mrf.mxu0 }
  0xf1   :  { %v243_v6 = vpop.f32.mrf.mxu1  ;;  %v176_v7 = vmul.f32 0.125, %v172_v5 }
  0xf2   :  { %v247_v8 = vmul.f32 0.125, %v243_v6  ;;  %v496_v10 = vpop.f32.mrf.mxu0 }
  0xf3   :  { %v501_v11 = vpop.f32.mrf.mxu1 }
  0xf4   :  { %v248_v12 = vsub.f32 %v176_v7, %v247_v8  ;;  %v358_v14 = vpop.f32.mrf.mxu0 }
  0xf5   :  { %v429_v15 = vpop.f32.mrf.mxu1  ;;  %v362_v16 = vmul.f32 0.125, %v358_v14 }
  0xf6   :  { %v433_v17 = vmul.f32 0.125, %v429_v15  ;;  %v249_v18 = vmul.f32 %v248_v12, %v248_v12  ;;  %v506_v20 = vpop.f32.mrf.mxu0  ;;  %s513_s0 = spop %512 }
  0xf7   :  { %v511_v21 = vpop.f32.mrf.mxu1  ;;  %v449_v62 = vstv %s513_s0 }
  0xf8   :  { %v434_v22 = vsub.f32 %v362_v16, %v433_v17  ;;  %v250_v23 = vsel %vm57_vm3, %v249_v18, 0.0  ;;  %v450_v63 = vsel %vm448_vm4, %v449_v62, 0.0 }
  0xf9   :  { %251 = vadd.xlane.f32.xlu1 %v250_v23 }
  0xfa   :  { %v435_v26 = vmul.f32 %v434_v22, %v434_v22 }
  0xfc   :  { %v436_v29 = vsel %vm57_vm3, %v435_v26, 0.0 }
  0xfd   :  { %281 = vadd.xlane.f32.xlu1 %v280_v25  ;;  %437 = vadd.xlane.f32.xlu0 %v436_v29 }
 0x109   :  { %s515_s1 = spop %514 }
 0x10a   :  { %v452_v0 = vstv %s515_s1 }
 0x10b   :  { %v453_v2 = vsel %vm451_vm5, %v452_v0, %v450_v63 }
 0x182   :  { %v252_v39 = vpop.xlane.xlu1 %251 }
 0x183   :  { %v253_v40 = vrot.slane %v252_v39, 4 }
 0x185   :  { %v254_v41 = vadd.f32 %v253_v40, %v252_v39 }
 0x186   :  { %v282_v42 = vpop.xlane.xlu1 %281  ;;  %v438_v43 = vpop.xlane.xlu0 %437 }
 0x187   :  { %v255_v44 = vrot.slane %v254_v41, 2  ;;  %v283_v45 = vrot.slane %v282_v42, 4  ;;  %v439_v46 = vrot.slane %v438_v43, 4 }
 0x189   :  { %v284_v47 = vadd.f32 %v283_v45, %v282_v42  ;;  %v440_v48 = vadd.f32 %v439_v46, %v438_v43  ;;  %v256_v49 = vadd.f32 %v255_v44, %v254_v41 }
 0x18b   :  { %v285_v50 = vrot.slane %v284_v47, 2  ;;  %v441_v51 = vrot.slane %v440_v48, 2  ;;  %v257_v52 = vrot.slane %v256_v49, 1 }
 0x18d   :  { %v286_v53 = vadd.f32 %v285_v50, %v284_v47  ;;  %v442_v54 = vadd.f32 %v441_v51, %v440_v48  ;;  %v258_v55 = vadd.f32 %v257_v52, %v256_v49 }
 0x18f   :  { %516 = vpush %v258_v55  ;;  %v287_v56 = vrot.slane %v286_v53, 1  ;;  %v443_v57 = vrot.slane %v442_v54, 1 }
 0x191   :  { %v288_v58 = vadd.f32 %v287_v56, %v286_v53  ;;  %v444_v59 = vadd.f32 %v443_v57, %v442_v54 }
 0x193   :  { %518 = vpush %v288_v58 }
 0x194   :  { %520 = vpush %v444_v59 }
 0x1c0   :  { %s517_s19 = spop %516 }
 0x1c1   :  { %v455_v1 = vstv %s517_s19 }
 0x1c2   :  { %v456_v3 = vsel %vm454_vm6, %v455_v1, %v453_v2 }
 0x1c4   :  { %s519_s22 = spop %518 }
 0x1c5   :  { %v458_v4 = vstv %s519_s22  ;;  %s521_s23 = spop %520 }
 0x1c6   :  { %v459_v5 = vsel %vm457_vm7, %v458_v4, %v456_v3  ;;  %v461_v6 = vstv %s521_s23 }
 0x1c7   :  { %v462_v7 = vsel %vm460_vm8, %v461_v6, %v459_v5 }
 0x1c8   :  { %463 = vst [vmem:[#allocation7] sm:$0xff] %v462_v7 }
 0x1c9   :  { %579 = shalt.err (!%p576_p0)
}
 0x1ca   :  { %473 = dma.vmem_to_hbm [thread:$0]  %s471_s21, 128, %s645_s2, [#allocation4]  }
 0x1cb   :  { %592 = dma.done.wait [#allocation4], 128  }
 0x1cc   :  { %593 = vsyncadd [#allocation4], 4294967168 }
 0x1cd   :  { %477 = vsyncpa [#allocation3], 1 }
 0x1ce   :  { %478 = vsyncpa [#allocation6], 1 }
 0x1cf   :  { %479 = vsyncpa [#allocation4], 1 }

</bundles_post_ra>
